<compile_context>
chip_gen: v5e
topology: v5e:2x2
jax: 0.10.0
libtpu: 0.0.40
codegen_flags: <defaults>
</compile_context>

<pallas_src>
import jax
import jax.numpy as jnp
from jax.experimental import pallas as pl
from jax.experimental.pallas import tpu as pltpu


_LANES = 1024                       # lane-dense slab width (multiple of 128)
_XLA_FALLBACK_BYTES = 1 << 20       # below this (or ragged) plain XLA is at roofline
_VMEM_LIMIT_BYTES = 32 * 1024 * 1024  # safe scoped-VMEM cap on v5e/v6e/v7x


def _round_up(x, m):
    return ((x + m - 1) // m) * m


def _is_v7x():
    # Trace-time / host-side query; never let it break the kernel path.
    try:
        kind = jax.devices()[0].device_kind.lower()
    except Exception:
        return False
    return ("v7" in kind) or ("7x" in kind)


# ---------------------------------------------------------------------------
# Backward Pallas kernel: grad_input = grad_output * (-lamb)
# ---------------------------------------------------------------------------
def _neg_scale_kernel(neg_lamb_ref, g_ref, o_ref):
    # neg_lamb_ref: (1,) f32 scalar in SMEM (already negated host-side)
    # g_ref / o_ref: (tm, _LANES) VMEM tiles
    scale = neg_lamb_ref[0].astype(o_ref.dtype)   # native-dtype VPU multiply
    o_ref[...] = g_ref[...] * scale


def _neg_scale(g, lamb):
    """Compute -lamb * g. HBM-bandwidth-bound streaming multiply."""
    total = g.size
    itemsize = g.dtype.itemsize

    # Ragged or tiny gradients: XLA's fused scalar multiply is already at the
    # HBM roofline; avoids pad/slice extra passes and pallas_call launch cost.
    if total == 0 or (total % _LANES) != 0 or total * itemsize < _XLA_FALLBACK_BYTES:
        return g * (-jnp.asarray(lamb, dtype=g.dtype))

    rows = total // _LANES
    g2d = g.reshape(rows, _LANES)

    # Per-generation tile-byte target (v7x: only 64 MiB VMEM but ~3.2 TB/s HBM,
    # so amortize the ~0.35 us/step cost with bigger tiles; v5e/v6e: 4 MiB).
    tile_bytes = (6 << 20) if _is_v7x() else (4 << 20)
    tm_target = max(256, tile_bytes // (_LANES * itemsize))

    # Balanced grid with an even number of tiles (so megacore / 2-TC sharding
    # splits the work evenly), rounded to the dtype's sublane packing.
    sub = max(8, 32 // itemsize)            # 8 for f32, 16 for bf16, 32 for int8
    num_tiles = pl.cdiv(rows, tm_target)
    if num_tiles % 2:
        num_tiles += 1
    num_tiles = max(num_tiles, 2)
    tm = min(rows, _round_up(pl.cdiv(rows, num_tiles), sub))
    grid = (pl.cdiv(rows, tm),)

    # Fold the negation into the scalar; keep it f32 in SMEM.
    neg_lamb = (-jnp.asarray(lamb, dtype=jnp.float32)).reshape(1)

    out2d = pl.pallas_call(
        _neg_scale_kernel,
        out_shape=jax.ShapeDtypeStruct((rows, _LANES), g.dtype),
        grid=grid,
        in_specs=[
            pl.BlockSpec(memory_space=pltpu.MemorySpace.SMEM),   # neg_lamb scalar
            pl.BlockSpec((tm, _LANES), lambda i: (i, 0)),        # grad tiles
        ],
        out_specs=pl.BlockSpec((tm, _LANES), lambda i: (i, 0)),
        input_output_aliases={1: 0},   # cotangent is dead after this VJP
        compiler_params=pltpu.CompilerParams(
            dimension_semantics=("parallel",),
            vmem_limit_bytes=_VMEM_LIMIT_BYTES),
    )(neg_lamb, g2d)

    return out2d.reshape(g.shape)


# ---------------------------------------------------------------------------
# RevGrad with custom VJP (gradient reversal)
# ---------------------------------------------------------------------------
@jax.custom_vjp
def revgrad(input_, lamb):
    # Forward is the identity: no kernel, no HBM traffic.
    return input_


def _revgrad_fwd(input_, lamb):
    return input_, lamb


def _revgrad_bwd(lamb, g):
    grad_in = _neg_scale(g, lamb)
    # PyTorch returns None for lamb's grad; JAX custom_vjp needs a zero cotangent.
    return grad_in, jnp.zeros_like(jnp.asarray(lamb))


revgrad.defvjp(_revgrad_fwd, _revgrad_bwd)


class RevGrad:
    """A gradient reversal layer (no parameters); mirrors the PyTorch module."""

    def __call__(self, input_, lamb):
        return revgrad(input_, lamb)


# ---------------------------------------------------------------------------
# Demo / self-check
# ---------------------------------------------------------------------------
if __name__ == "__main__":
    key = jax.random.PRNGKey(0)
    k1, k2, k3, k4 = jax.random.split(key, 4)

    layer = RevGrad()
    lamb = jnp.float32(0.7)

    # Small NCHW input: forward identity + backward via the XLA fallback path.
    x = jax.random.normal(k1, (2, 4, 16, 16), dtype=jnp.float32)
    y = jax.block_until_ready(layer(x, lamb))
    assert y.shape == x.shape and y.dtype == x.dtype
    assert jnp.allclose(y, x), "forward must be identity"

    gx = jax.block_until_ready(jax.grad(lambda xx: jnp.sum(layer(xx, lamb)))(x))
    assert jnp.allclose(gx, -lamb * jnp.ones_like(x), atol=1e-6), \
        "backward must be -lamb * grad_output"

    # Ragged shape (3*5*7*11 = 1155 elems): XLA fallback, no pad/slice passes.
    x_odd = jax.random.normal(k2, (3, 5, 7, 11), dtype=jnp.float32)
    g_odd = jax.block_until_ready(
        jax.grad(lambda xx: jnp.sum(layer(xx, lamb)))(x_odd))
    assert jnp.allclose(g_odd, -lamb * jnp.ones_like(x_odd), atol=1e-6), \
        "backward must be -lamb * grad_output (odd shape)"

    # Lane-aligned, >= 1 MiB gradient: exercises the Pallas streaming kernel
    # (524288 elems = 512 rows x 1024 lanes, split into a balanced even grid).
    x_big = jax.random.normal(k3, (8, 32, 64, 32), dtype=jnp.float32)
    ct = jax.random.normal(k4, x_big.shape, dtype=jnp.float32)
    expected = -lamb * ct
    _, vjp_fn = jax.vjp(lambda xx: layer(xx, lamb), x_big)
    (gx_big,) = vjp_fn(ct)
    gx_big = jax.block_until_ready(gx_big)
    assert jnp.allclose(gx_big, expected, atol=1e-6), \
        "Pallas backward must equal -lamb * cotangent"

    print("KERNEL_OK")
</pallas_src>

<mosaic_0001>
module attributes {stable_mosaic.version = 11 : i64} {
  func.func @_neg_scale_kernel(%arg0: i32, %arg1: memref<1xf32, #tpu.memory_space<smem>>, %arg2: memref<256x1024xf32, #tpu.memory_space<vmem>>, %arg3: memref<256x1024xf32, #tpu.memory_space<vmem>>) attributes {dimension_semantics = [#tpu.dimension_semantics<parallel>], iteration_bounds = array<i64: 2>, scalar_prefetch = 0 : i64, scratch_operands = 0 : i64, tpu.core_type = #tpu.core_type<tc>, window_params = [{transform_indices = @transform_0, window_bounds = array<i64: 1>}, {transform_indices = @transform_1, window_bounds = array<i64: 256, 1024>}, {transform_indices = @transform_2, window_bounds = array<i64: 256, 1024>}]} {
    %c0 = arith.constant 0 : index
    %0 = memref.load %arg1[%c0] : memref<1xf32, #tpu.memory_space<smem>>
    %c0_0 = arith.constant 0 : index
    %c0_1 = arith.constant 0 : index
    %1 = vector.load %arg2[%c0_0, %c0_1] : memref<256x1024xf32, #tpu.memory_space<vmem>>, vector<256x1024xf32>
    %2 = vector.broadcast %0 : f32 to vector<256x1024xf32>
    %3 = arith.mulf %1, %2 : vector<256x1024xf32>
    %c0_2 = arith.constant 0 : index
    %c0_3 = arith.constant 0 : index
    %4 = vector.load %arg3[%c0_2, %c0_3] : memref<256x1024xf32, #tpu.memory_space<vmem>>, vector<256x1024xf32>
    tpu.vector_store %arg3[%c0_2, %c0_3], %3 {strides = array<i32>} : memref<256x1024xf32, #tpu.memory_space<vmem>>, vector<256x1024xf32>,
    return
  }
  func.func @transform_0(%arg0: i32) -> i32 {
    %c0_i32 = arith.constant 0 : i32
    %c0_i32_0 = arith.constant 0 : i32
    return %c0_i32 : i32
  }
  func.func @transform_1(%arg0: i32) -> (i32, i32) {
    %c0_i32 = arith.constant 0 : i32
    %c0_i32_0 = arith.constant 0 : i32
    return %arg0, %c0_i32 : i32, i32
  }
  func.func @transform_2(%arg0: i32) -> (i32, i32) {
    %c0_i32 = arith.constant 0 : i32
    %c0_i32_0 = arith.constant 0 : i32
    return %arg0, %c0_i32 : i32, i32
  }
}

</mosaic_0001>

<bundles_post_ra>
// kernel: tpu_custom_call.1
= control target key start
LH: loop header
LB: loop body
LE: loop exit
PB: predicated region body
PF: predicated region fallthrough
CT: control target
= control target key end

     0   :  { %s2120_s0 = inlined_call_operand.<no memory space> [shape: f32[1], index: 0, kind: input, shape index: {}]   ;;  %s2121_s1 = inlined_call_operand.hbm [shape: f32[512,1024], index: 1, kind: input, shape index: {}, may-alias: {1,2}]   ;;  %s2122_s2 = inlined_call_operand.hbm [shape: f32[512,1024], index: 2, kind: output, shape index: {}, may-alias: {1,2}]  }
   0x1   :  { %7 = sst [smem:[#allocation2]] %s2120_s0 }
   0x2   :  { %8 = vsyncpa [#allocation4], 0 }
   0x3   :  { %10 = vsyncpa [#allocation4 + $0x1], 0 }
   0x4   :  { %11 = vsyncpa [#allocation5], 0 }
   0x5   :  { %13 = vsyncpa [#allocation5 + $0x1], 0  ;;  %s1218_s11 = smov 0   ;;  %s1220_s12 = smov 0  }
   0x6   :  { %s1222_s13 = smov 0   ;;  %s1224_s14 = smov 0  }
   0x7 LB: > { %s1239_s0 = sadd.s32 4294967295, %s1194_s14   ;;  %s1028_s15 = sadd.s32 4294967294, %s1194_s14   ;;  %s1194_s14 = sphi %s1224_s14, %s2132_s14   ;;  %s1190_s13 = sphi %s1222_s13, %s2131_s13   ;;  %s1186_s12 = sphi %s1220_s12, %s2130_s12   ;;  %s1182_s11 = sphi %s1218_s11, %s2129_s11  }
   0x8   : > { %s1243_s16 = sadd.s32 1, %s1194_s14   ;;  %s47_s17 = sadd.s32 1, %s1190_s13 }
   0x9   : > { %s44_s18 = ssub.s32 %s1194_s14, %s1243_s16  ;;  %p54_p0 = scmp.ne.s32.totalorder %s1190_s13, %s1186_s12 }
   0xa   : > { %p45_p1 = scmp.eq.s32.totalorder %s44_s18, 0  ;;  %p55_p2 = scmp.eq.s32.totalorder %s1194_s14, 0 }
   0xb   : > { %p60_p3 = scmp.ne.s32.totalorder %s1186_s12, %s1182_s11  ;;  %p61_p4 = scmp.eq.s32.totalorder %s1239_s0, 0 }
   0xc   : > { %s1255_s19 = scalar_select %p45_p1, %s1190_s13, %s47_s17  }
   0xd   : > { %p1257_p5 = por %p55_p2, %p54_p0  ;;  %p1261_p6 = por %p61_p4, %p60_p3 }
   0xe   : > { %p84_p7 = scmp.eq.s32.totalorder %s1239_s0, 1  ;;  %p90_p8 = scmp.eq.s32.totalorder %s1028_s15, 1 }
   0xf   : > { %p1060_p10 = scmp.lt.s32.totalorder %s1194_s14, 2  ;;  %s113_s24 = sand.u32 1, %s1190_s13  }
  0x10   : > { %p1268_p11 = por %p84_p7, %p54_p0  ;;  %p1272_p12 = por %p90_p8, %p60_p3 }
  0x11   : > { %s1045_s25 = sshll.u32 %s1194_s14, 11  ;;  %s1031_s26 = sshll.u32 %s113_s24, 11 }
  0x12   : > { %s123_s29 = scalar_lea.hbm %s2121_s1, %s1045_s25  ;;  %s117_s3 = scalar_lea.vmem [#allocation3], %s1031_s26 }
  0x13   : > { %s124_s30 = sshll.u32 %s123_s29, 4  ;;  %s126_s4 = sshll.u32 %s117_s3, 4  ;;  %s125_s30 = int_to_ptr.hbm [resolvable:$true] %s124_s30  ;;  %s127_s4 = int_to_ptr.vmem [resolvable:$true] %s126_s4 }
  0x14   : > { %p1283_p13 = pnand %p1060_p10, %p1257_p5  ;;  %p1035_p0 = scmp.ge.s32.totalorder %s1194_s14, 1 }
  0x15   : > { %p134_p1 = scmp.lt.s32.totalorder %s1194_s14, 3  ;;  %s114_s6 = scalar_lea.sflag [#allocation4], %s113_s24 }
  0x16   : > { %s1098_s7 = sshra.s32 %s125_s30, 4  ;;  %p1102_p3 = pneg %p1283_p13  ;;  %s1099_s7 = int_to_ptr.hbm [resolvable:$true] %s1098_s7 }
  0x17   : > { %s1100_s8 = scalar_lea.hbm %s1099_s7, 2048  ;;  %s1105_s15 = scalar_lea.hbm %s2121_s1, 4096 }
  0x18   : > { %p1101_p2 = scmp.ne.s32.totalorder %s1099_s7, %s1100_s8  ;;  %p1106_p5 = scmp.lt.s32.totalorder %s1099_s7, %s2121_s1 }
  0x19   : > { %p1107_p8 = scmp.lt.s32.totalorder %s1105_s15, %s1100_s8 }
  0x1a   : > { %p1103_p4 = pnand %p1102_p3, %p1101_p2 }
  0x1b   : > { %p1108_p10 = por %p1107_p8, %p1106_p5 }
  0x1c   : > { %p1104_p7 = pneg %p1103_p4 }
  0x1e   : > { %p1109_p9 = pnand %p1108_p10, %p1104_p7 }
  0x20   : > { %1112 = shalt.err (!%p1109_p9)
}
  0x21   : > { %s1196_s20 = smov 1024   ;;  %s1197_s24 = smov 64  }
  0x22   : > { %1055 = dma.hbm_to_vmem [thread:$0]  (!%p1283_p13), %s125_s30, 32768, %s127_s4, %s114_s6, %s1196_s20, %s1196_s20, %s1197_s24  }
  0x23   : > { %p135_p2 = pnand %p1035_p0, %p134_p1 }
  0x24   : > { %s1304_s25 = sand.u32 (!%p135_p2), 1, %s1186_s12  }
  0x25   : > { %138 = sbr.rel (%p135_p2) target bundleno = 311 (0x137), region = 28  ;;  %s1036_s26 = sshll.u32 (!%p135_p2), %s1304_s25, 11 }
  0x26   : > { %s141_s27 = scalar_lea.sflag (!%p135_p2), [#allocation4], %s1304_s25  ;;  %s1308_s28 = scalar_lea.vmem (!%p135_p2), [#allocation3], %s1036_s26 }
  0x2a   : > { %1173 = dma.done.wait (%p1261_p6), %s141_s27, 32768  }
  0x2b   : > { %1175 = vsyncadd (%p1261_p6), %s141_s27, 4294934528  ;;  %s168_s29 = sld [smem:[#allocation2]]  ;;  %v169_v0 = vld [vmem:[%s1308_s28] sm:$0xff]  ;;  %v170_v2 = vld [vmem:[%s1308_s28 + $0x8] sm:$0xff]  ;;  %s1327_s21 = scalar_lea.vmem [#allocation6], %s1036_s26 }
  0x2c   : > { %v171_v3 = vld [vmem:[%s1308_s28 + $0x10] sm:$0xff]  ;;  %v172_v7 = vld [vmem:[%s1308_s28 + $0x18] sm:$0xff]  ;;  %v173_v8 = vld [vmem:[%s1308_s28 + $0x20] sm:$0xff]  ;;  %s1047_s30 = sshll.u32 %s1239_s0, 11  ;;  %s952_s5 = sshll.u32 %s1327_s21, 4  ;;  %s953_s5 = int_to_ptr.vmem [resolvable:$true] %s952_s5 }
  0x2d   : > { %v174_v9 = vld [vmem:[%s1308_s28 + $0x28] sm:$0xff]  ;;  %v175_v11 = vld [vmem:[%s1308_s28 + $0x30] sm:$0xff]  ;;  %v176_v13 = vld [vmem:[%s1308_s28 + $0x38] sm:$0xff]  ;;  %s951_s0 = scalar_lea.hbm %s2122_s2, %s1047_s30  ;;  %s939_s7 = scalar_lea.sflag [#allocation5], %s1304_s25 }
  0x2e   : > { %v177_v15 = vld [vmem:[%s1308_s28 + $0x40] sm:$0xff]  ;;  %v178_v17 = vld [vmem:[%s1308_s28 + $0x48] sm:$0xff]  ;;  %v179_v19 = vld [vmem:[%s1308_s28 + $0x50] sm:$0xff]  ;;  %s954_s6 = sshll.u32 %s951_s0, 4  ;;  %s1148_s17 = scalar_lea.hbm %s2122_s2, 4096  ;;  %s955_s6 = int_to_ptr.hbm [resolvable:$true] %s954_s6 }
  0x2f   : > { %v180_v21 = vld [vmem:[%s1308_s28 + $0x58] sm:$0xff]  ;;  %v181_v23 = vld [vmem:[%s1308_s28 + $0x60] sm:$0xff]  ;;  %v182_v25 = vld [vmem:[%s1308_s28 + $0x68] sm:$0xff]  ;;  %s1142_s8 = sshra.s32 %s955_s6, 4  ;;  %s1143_s8 = int_to_ptr.hbm [resolvable:$true] %s1142_s8 }
  0x30   : > { %v183_v27 = vld [vmem:[%s1308_s28 + $0x70] sm:$0xff]  ;;  %v184_v29 = vld [vmem:[%s1308_s28 + $0x78] sm:$0xff]  ;;  %v185_v31 = vld [vmem:[%s1308_s28 + $0x80] sm:$0xff]  ;;  %s1144_s9 = scalar_lea.hbm %s1143_s8, 2048  ;;  %p1149_p0 = scmp.lt.s32.totalorder %s1143_s8, %s2122_s2 }
  0x31   : > { %v1315_v1 = vstv %s168_s29  ;;  %v186_v33 = vld [vmem:[%s1308_s28 + $0x88] sm:$0xff]  ;;  %v187_v35 = vld [vmem:[%s1308_s28 + $0x90] sm:$0xff]  ;;  %v188_v37 = vld [vmem:[%s1308_s28 + $0x98] sm:$0xff]  ;;  %p1145_p6 = scmp.ne.s32.totalorder %s1143_s8, %s1144_s9  ;;  %p1150_p1 = scmp.lt.s32.totalorder %s1148_s17, %s1144_s9 }
  0x32   : > { %v426_v4 = vmul.f32 %v1315_v1, %v169_v0  ;;  %v427_v5 = vmul.f32 %v1315_v1, %v170_v2  ;;  %v428_v6 = vmul.f32 %v1315_v1, %v171_v3  ;;  %v429_v10 = vmul.f32 %v1315_v1, %v172_v7  ;;  %v189_v39 = vld [vmem:[%s1308_s28 + $0xa0] sm:$0xff]  ;;  %v190_v41 = vld [vmem:[%s1308_s28 + $0xa8] sm:$0xff]  ;;  %v191_v43 = vld [vmem:[%s1308_s28 + $0xb0] sm:$0xff] }
  0x33   : > { %v430_v12 = vmul.f32 %v1315_v1, %v173_v8  ;;  %v431_v14 = vmul.f32 %v1315_v1, %v174_v9  ;;  %v432_v16 = vmul.f32 %v1315_v1, %v175_v11  ;;  %v433_v18 = vmul.f32 %v1315_v1, %v176_v13  ;;  %v192_v45 = vld [vmem:[%s1308_s28 + $0xb8] sm:$0xff]  ;;  %v193_v47 = vld [vmem:[%s1308_s28 + $0xc0] sm:$0xff]  ;;  %v194_v49 = vld [vmem:[%s1308_s28 + $0xc8] sm:$0xff]  ;;  %p1146_p9 = pnand %p1145_p6, %p1268_p11  ;;  %p1151_p3 = por %p1150_p1, %p1149_p0 }
  0x34   : > { %682 = vst [vmem:[%s1327_s21] sm:$0xff] %v426_v4  ;;  %v434_v20 = vmul.f32 %v1315_v1, %v177_v15  ;;  %v435_v22 = vmul.f32 %v1315_v1, %v178_v17  ;;  %v436_v24 = vmul.f32 %v1315_v1, %v179_v19  ;;  %v437_v26 = vmul.f32 %v1315_v1, %v180_v21  ;;  %v195_v51 = vld [vmem:[%s1308_s28 + $0xd0] sm:$0xff]  ;;  %v196_v53 = vld [vmem:[%s1308_s28 + $0xd8] sm:$0xff]  ;;  %v197_v55 = vld [vmem:[%s1308_s28 + $0xe0] sm:$0xff] }
  0x35   : > { %683 = vst [vmem:[%s1327_s21 + $0x8] sm:$0xff] %v427_v5  ;;  %v438_v28 = vmul.f32 %v1315_v1, %v181_v23  ;;  %v439_v30 = vmul.f32 %v1315_v1, %v182_v25  ;;  %v440_v32 = vmul.f32 %v1315_v1, %v183_v27  ;;  %v441_v34 = vmul.f32 %v1315_v1, %v184_v29  ;;  %v198_v57 = vld [vmem:[%s1308_s28 + $0xe8] sm:$0xff]  ;;  %v199_v59 = vld [vmem:[%s1308_s28 + $0xf0] sm:$0xff]  ;;  %v200_v61 = vld [vmem:[%s1308_s28 + $0xf8] sm:$0xff]  ;;  %p1147_p13 = pneg %p1146_p9 }
  0x36   : > { %684 = vst [vmem:[%s1327_s21 + $0x10] sm:$0xff] %v428_v6  ;;  %v442_v36 = vmul.f32 %v1315_v1, %v185_v31  ;;  %v443_v38 = vmul.f32 %v1315_v1, %v186_v33  ;;  %v444_v40 = vmul.f32 %v1315_v1, %v187_v35  ;;  %v445_v42 = vmul.f32 %v1315_v1, %v188_v37  ;;  %v201_v63 = vld [vmem:[%s1308_s28 + $0x100] sm:$0xff]  ;;  %v202_v2 = vld [vmem:[%s1308_s28 + $0x108] sm:$0xff]  ;;  %v203_v4 = vld [vmem:[%s1308_s28 + $0x110] sm:$0xff] }
  0x37   : > { %685 = vst [vmem:[%s1327_s21 + $0x18] sm:$0xff] %v429_v10  ;;  %v446_v44 = vmul.f32 %v1315_v1, %v189_v39  ;;  %v447_v46 = vmul.f32 %v1315_v1, %v190_v41  ;;  %v448_v48 = vmul.f32 %v1315_v1, %v191_v43  ;;  %v449_v50 = vmul.f32 %v1315_v1, %v192_v45  ;;  %v204_v6 = vld [vmem:[%s1308_s28 + $0x118] sm:$0xff]  ;;  %v205_v8 = vld [vmem:[%s1308_s28 + $0x120] sm:$0xff]  ;;  %v206_v10 = vld [vmem:[%s1308_s28 + $0x128] sm:$0xff]  ;;  %p1152_p4 = pnand %p1151_p3, %p1147_p13 }
  0x38   : > { %686 = vst [vmem:[%s1327_s21 + $0x20] sm:$0xff] %v430_v12  ;;  %v450_v52 = vmul.f32 %v1315_v1, %v193_v47  ;;  %v451_v54 = vmul.f32 %v1315_v1, %v194_v49  ;;  %v452_v56 = vmul.f32 %v1315_v1, %v195_v51  ;;  %v453_v58 = vmul.f32 %v1315_v1, %v196_v53  ;;  %v207_v12 = vld [vmem:[%s1308_s28 + $0x130] sm:$0xff] }
  0x39   : > { %687 = vst [vmem:[%s1327_s21 + $0x28] sm:$0xff] %v431_v14  ;;  %v454_v60 = vmul.f32 %v1315_v1, %v197_v55  ;;  %v455_v62 = vmul.f32 %v1315_v1, %v198_v57  ;;  %v456_v0 = vmul.f32 %v1315_v1, %v199_v59  ;;  %v457_v3 = vmul.f32 %v1315_v1, %v200_v61  ;;  %v208_v14 = vld [vmem:[%s1308_s28 + $0x138] sm:$0xff] }
  0x3a   : > { %688 = vst [vmem:[%s1327_s21 + $0x30] sm:$0xff] %v432_v16  ;;  %v458_v5 = vmul.f32 %v1315_v1, %v201_v63  ;;  %v459_v7 = vmul.f32 %v1315_v1, %v202_v2  ;;  %v460_v9 = vmul.f32 %v1315_v1, %v203_v4  ;;  %v461_v11 = vmul.f32 %v1315_v1, %v204_v6  ;;  %v209_v16 = vld [vmem:[%s1308_s28 + $0x140] sm:$0xff] }
  0x3b   : > { %689 = vst [vmem:[%s1327_s21 + $0x38] sm:$0xff] %v433_v18  ;;  %v462_v13 = vmul.f32 %v1315_v1, %v205_v8  ;;  %v463_v15 = vmul.f32 %v1315_v1, %v206_v10  ;;  %v464_v17 = vmul.f32 %v1315_v1, %v207_v12  ;;  %v210_v18 = vld [vmem:[%s1308_s28 + $0x148] sm:$0xff]  ;;  %v465_v19 = vmul.f32 %v1315_v1, %v208_v14 }
  0x3c   : > { %690 = vst [vmem:[%s1327_s21 + $0x40] sm:$0xff] %v434_v20  ;;  %v211_v20 = vld [vmem:[%s1308_s28 + $0x150] sm:$0xff]  ;;  %v466_v21 = vmul.f32 %v1315_v1, %v209_v16  ;;  %v467_v23 = vmul.f32 %v1315_v1, %v210_v18 }
  0x3d   : > { %691 = vst [vmem:[%s1327_s21 + $0x48] sm:$0xff] %v435_v22  ;;  %v212_v22 = vld [vmem:[%s1308_s28 + $0x158] sm:$0xff]  ;;  %v468_v25 = vmul.f32 %v1315_v1, %v211_v20 }
  0x3e   : > { %692 = vst [vmem:[%s1327_s21 + $0x50] sm:$0xff] %v436_v24  ;;  %v213_v24 = vld [vmem:[%s1308_s28 + $0x160] sm:$0xff]  ;;  %v469_v27 = vmul.f32 %v1315_v1, %v212_v22 }
  0x3f   : > { %693 = vst [vmem:[%s1327_s21 + $0x58] sm:$0xff] %v437_v26  ;;  %v214_v26 = vld [vmem:[%s1308_s28 + $0x168] sm:$0xff]  ;;  %v470_v29 = vmul.f32 %v1315_v1, %v213_v24 }
  0x40   : > { %694 = vst [vmem:[%s1327_s21 + $0x60] sm:$0xff] %v438_v28  ;;  %v215_v28 = vld [vmem:[%s1308_s28 + $0x170] sm:$0xff]  ;;  %v471_v31 = vmul.f32 %v1315_v1, %v214_v26 }
  0x41   : > { %695 = vst [vmem:[%s1327_s21 + $0x68] sm:$0xff] %v439_v30  ;;  %v216_v30 = vld [vmem:[%s1308_s28 + $0x178] sm:$0xff]  ;;  %v472_v33 = vmul.f32 %v1315_v1, %v215_v28 }
  0x42   : > { %696 = vst [vmem:[%s1327_s21 + $0x70] sm:$0xff] %v440_v32  ;;  %v217_v32 = vld [vmem:[%s1308_s28 + $0x180] sm:$0xff]  ;;  %v473_v35 = vmul.f32 %v1315_v1, %v216_v30 }
  0x43   : > { %697 = vst [vmem:[%s1327_s21 + $0x78] sm:$0xff] %v441_v34  ;;  %v218_v34 = vld [vmem:[%s1308_s28 + $0x188] sm:$0xff]  ;;  %v474_v37 = vmul.f32 %v1315_v1, %v217_v32 }
  0x44   : > { %698 = vst [vmem:[%s1327_s21 + $0x80] sm:$0xff] %v442_v36  ;;  %v219_v36 = vld [vmem:[%s1308_s28 + $0x190] sm:$0xff]  ;;  %v475_v39 = vmul.f32 %v1315_v1, %v218_v34 }
  0x45   : > { %699 = vst [vmem:[%s1327_s21 + $0x88] sm:$0xff] %v443_v38  ;;  %v220_v38 = vld [vmem:[%s1308_s28 + $0x198] sm:$0xff]  ;;  %v476_v41 = vmul.f32 %v1315_v1, %v219_v36 }
  0x46   : > { %700 = vst [vmem:[%s1327_s21 + $0x90] sm:$0xff] %v444_v40  ;;  %v221_v40 = vld [vmem:[%s1308_s28 + $0x1a0] sm:$0xff]  ;;  %v477_v43 = vmul.f32 %v1315_v1, %v220_v38 }
  0x47   : > { %701 = vst [vmem:[%s1327_s21 + $0x98] sm:$0xff] %v445_v42  ;;  %v222_v42 = vld [vmem:[%s1308_s28 + $0x1a8] sm:$0xff]  ;;  %v478_v45 = vmul.f32 %v1315_v1, %v221_v40 }
  0x48   : > { %702 = vst [vmem:[%s1327_s21 + $0xa0] sm:$0xff] %v446_v44  ;;  %v223_v44 = vld [vmem:[%s1308_s28 + $0x1b0] sm:$0xff]  ;;  %v479_v47 = vmul.f32 %v1315_v1, %v222_v42 }
  0x49   : > { %703 = vst [vmem:[%s1327_s21 + $0xa8] sm:$0xff] %v447_v46  ;;  %v224_v46 = vld [vmem:[%s1308_s28 + $0x1b8] sm:$0xff]  ;;  %v480_v49 = vmul.f32 %v1315_v1, %v223_v44 }
  0x4a   : > { %704 = vst [vmem:[%s1327_s21 + $0xb0] sm:$0xff] %v448_v48  ;;  %v225_v48 = vld [vmem:[%s1308_s28 + $0x1c0] sm:$0xff]  ;;  %v481_v51 = vmul.f32 %v1315_v1, %v224_v46 }
  0x4b   : > { %705 = vst [vmem:[%s1327_s21 + $0xb8] sm:$0xff] %v449_v50  ;;  %v226_v50 = vld [vmem:[%s1308_s28 + $0x1c8] sm:$0xff]  ;;  %v482_v53 = vmul.f32 %v1315_v1, %v225_v48 }
  0x4c   : > { %706 = vst [vmem:[%s1327_s21 + $0xc0] sm:$0xff] %v450_v52  ;;  %v227_v52 = vld [vmem:[%s1308_s28 + $0x1d0] sm:$0xff]  ;;  %v483_v55 = vmul.f32 %v1315_v1, %v226_v50 }
  0x4d   : > { %707 = vst [vmem:[%s1327_s21 + $0xc8] sm:$0xff] %v451_v54  ;;  %v228_v54 = vld [vmem:[%s1308_s28 + $0x1d8] sm:$0xff]  ;;  %v484_v57 = vmul.f32 %v1315_v1, %v227_v52 }
  0x4e   : > { %708 = vst [vmem:[%s1327_s21 + $0xd0] sm:$0xff] %v452_v56  ;;  %v229_v56 = vld [vmem:[%s1308_s28 + $0x1e0] sm:$0xff]  ;;  %v485_v59 = vmul.f32 %v1315_v1, %v228_v54 }
  0x4f   : > { %709 = vst [vmem:[%s1327_s21 + $0xd8] sm:$0xff] %v453_v58  ;;  %v230_v58 = vld [vmem:[%s1308_s28 + $0x1e8] sm:$0xff]  ;;  %v486_v61 = vmul.f32 %v1315_v1, %v229_v56 }
  0x50   : > { %710 = vst [vmem:[%s1327_s21 + $0xe0] sm:$0xff] %v454_v60  ;;  %v231_v60 = vld [vmem:[%s1308_s28 + $0x1f0] sm:$0xff]  ;;  %v487_v63 = vmul.f32 %v1315_v1, %v230_v58 }
  0x51   : > { %711 = vst [vmem:[%s1327_s21 + $0xe8] sm:$0xff] %v455_v62  ;;  %v232_v62 = vld [vmem:[%s1308_s28 + $0x1f8] sm:$0xff]  ;;  %v488_v2 = vmul.f32 %v1315_v1, %v231_v60 }
  0x52   : > { %712 = vst [vmem:[%s1327_s21 + $0xf0] sm:$0xff] %v456_v0  ;;  %v233_v0 = vld [vmem:[%s1308_s28 + $0x200] sm:$0xff]  ;;  %v489_v4 = vmul.f32 %v1315_v1, %v232_v62 }
  0x53   : > { %713 = vst [vmem:[%s1327_s21 + $0xf8] sm:$0xff] %v457_v3  ;;  %v234_v3 = vld [vmem:[%s1308_s28 + $0x208] sm:$0xff]  ;;  %v490_v6 = vmul.f32 %v1315_v1, %v233_v0 }
  0x54   : > { %714 = vst [vmem:[%s1327_s21 + $0x100] sm:$0xff] %v458_v5  ;;  %v235_v5 = vld [vmem:[%s1308_s28 + $0x210] sm:$0xff]  ;;  %v491_v8 = vmul.f32 %v1315_v1, %v234_v3 }
  0x55   : > { %715 = vst [vmem:[%s1327_s21 + $0x108] sm:$0xff] %v459_v7  ;;  %v236_v7 = vld [vmem:[%s1308_s28 + $0x218] sm:$0xff]  ;;  %v492_v10 = vmul.f32 %v1315_v1, %v235_v5 }
  0x56   : > { %716 = vst [vmem:[%s1327_s21 + $0x110] sm:$0xff] %v460_v9  ;;  %v237_v9 = vld [vmem:[%s1308_s28 + $0x220] sm:$0xff]  ;;  %v493_v12 = vmul.f32 %v1315_v1, %v236_v7 }
  0x57   : > { %717 = vst [vmem:[%s1327_s21 + $0x118] sm:$0xff] %v461_v11  ;;  %v238_v11 = vld [vmem:[%s1308_s28 + $0x228] sm:$0xff]  ;;  %v494_v14 = vmul.f32 %v1315_v1, %v237_v9 }
  0x58   : > { %718 = vst [vmem:[%s1327_s21 + $0x120] sm:$0xff] %v462_v13  ;;  %v239_v13 = vld [vmem:[%s1308_s28 + $0x230] sm:$0xff]  ;;  %v495_v16 = vmul.f32 %v1315_v1, %v238_v11 }
  0x59   : > { %719 = vst [vmem:[%s1327_s21 + $0x128] sm:$0xff] %v463_v15  ;;  %v240_v15 = vld [vmem:[%s1308_s28 + $0x238] sm:$0xff]  ;;  %v496_v18 = vmul.f32 %v1315_v1, %v239_v13 }
  0x5a   : > { %720 = vst [vmem:[%s1327_s21 + $0x130] sm:$0xff] %v464_v17  ;;  %v241_v17 = vld [vmem:[%s1308_s28 + $0x240] sm:$0xff]  ;;  %v497_v20 = vmul.f32 %v1315_v1, %v240_v15 }
  0x5b   : > { %721 = vst [vmem:[%s1327_s21 + $0x138] sm:$0xff] %v465_v19  ;;  %v242_v19 = vld [vmem:[%s1308_s28 + $0x248] sm:$0xff]  ;;  %v498_v22 = vmul.f32 %v1315_v1, %v241_v17 }
  0x5c   : > { %722 = vst [vmem:[%s1327_s21 + $0x140] sm:$0xff] %v466_v21  ;;  %v243_v21 = vld [vmem:[%s1308_s28 + $0x250] sm:$0xff]  ;;  %v499_v24 = vmul.f32 %v1315_v1, %v242_v19 }
  0x5d   : > { %723 = vst [vmem:[%s1327_s21 + $0x148] sm:$0xff] %v467_v23  ;;  %v244_v23 = vld [vmem:[%s1308_s28 + $0x258] sm:$0xff]  ;;  %v500_v26 = vmul.f32 %v1315_v1, %v243_v21 }
  0x5e   : > { %724 = vst [vmem:[%s1327_s21 + $0x150] sm:$0xff] %v468_v25  ;;  %v245_v25 = vld [vmem:[%s1308_s28 + $0x260] sm:$0xff]  ;;  %v501_v28 = vmul.f32 %v1315_v1, %v244_v23 }
  0x5f   : > { %725 = vst [vmem:[%s1327_s21 + $0x158] sm:$0xff] %v469_v27  ;;  %v246_v27 = vld [vmem:[%s1308_s28 + $0x268] sm:$0xff]  ;;  %v502_v30 = vmul.f32 %v1315_v1, %v245_v25 }
  0x60   : > { %726 = vst [vmem:[%s1327_s21 + $0x160] sm:$0xff] %v470_v29  ;;  %v247_v29 = vld [vmem:[%s1308_s28 + $0x270] sm:$0xff]  ;;  %v503_v32 = vmul.f32 %v1315_v1, %v246_v27 }
  0x61   : > { %727 = vst [vmem:[%s1327_s21 + $0x168] sm:$0xff] %v471_v31  ;;  %v248_v31 = vld [vmem:[%s1308_s28 + $0x278] sm:$0xff]  ;;  %v504_v34 = vmul.f32 %v1315_v1, %v247_v29 }
  0x62   : > { %728 = vst [vmem:[%s1327_s21 + $0x170] sm:$0xff] %v472_v33  ;;  %v249_v33 = vld [vmem:[%s1308_s28 + $0x280] sm:$0xff]  ;;  %v505_v36 = vmul.f32 %v1315_v1, %v248_v31 }
  0x63   : > { %729 = vst [vmem:[%s1327_s21 + $0x178] sm:$0xff] %v473_v35  ;;  %v250_v35 = vld [vmem:[%s1308_s28 + $0x288] sm:$0xff]  ;;  %v506_v38 = vmul.f32 %v1315_v1, %v249_v33 }
  0x64   : > { %730 = vst [vmem:[%s1327_s21 + $0x180] sm:$0xff] %v474_v37  ;;  %v251_v37 = vld [vmem:[%s1308_s28 + $0x290] sm:$0xff]  ;;  %v507_v40 = vmul.f32 %v1315_v1, %v250_v35 }
  0x65   : > { %731 = vst [vmem:[%s1327_s21 + $0x188] sm:$0xff] %v475_v39  ;;  %v252_v39 = vld [vmem:[%s1308_s28 + $0x298] sm:$0xff]  ;;  %v508_v42 = vmul.f32 %v1315_v1, %v251_v37 }
  0x66   : > { %732 = vst [vmem:[%s1327_s21 + $0x190] sm:$0xff] %v476_v41  ;;  %v253_v41 = vld [vmem:[%s1308_s28 + $0x2a0] sm:$0xff]  ;;  %v509_v44 = vmul.f32 %v1315_v1, %v252_v39 }
  0x67   : > { %733 = vst [vmem:[%s1327_s21 + $0x198] sm:$0xff] %v477_v43  ;;  %v254_v43 = vld [vmem:[%s1308_s28 + $0x2a8] sm:$0xff]  ;;  %v510_v46 = vmul.f32 %v1315_v1, %v253_v41 }
  0x68   : > { %734 = vst [vmem:[%s1327_s21 + $0x1a0] sm:$0xff] %v478_v45  ;;  %v255_v45 = vld [vmem:[%s1308_s28 + $0x2b0] sm:$0xff]  ;;  %v511_v48 = vmul.f32 %v1315_v1, %v254_v43 }
  0x69   : > { %735 = vst [vmem:[%s1327_s21 + $0x1a8] sm:$0xff] %v479_v47  ;;  %v256_v47 = vld [vmem:[%s1308_s28 + $0x2b8] sm:$0xff]  ;;  %v512_v50 = vmul.f32 %v1315_v1, %v255_v45 }
  0x6a   : > { %736 = vst [vmem:[%s1327_s21 + $0x1b0] sm:$0xff] %v480_v49  ;;  %v257_v49 = vld [vmem:[%s1308_s28 + $0x2c0] sm:$0xff]  ;;  %v513_v52 = vmul.f32 %v1315_v1, %v256_v47 }
  0x6b   : > { %737 = vst [vmem:[%s1327_s21 + $0x1b8] sm:$0xff] %v481_v51  ;;  %v258_v51 = vld [vmem:[%s1308_s28 + $0x2c8] sm:$0xff]  ;;  %v514_v54 = vmul.f32 %v1315_v1, %v257_v49 }
  0x6c   : > { %738 = vst [vmem:[%s1327_s21 + $0x1c0] sm:$0xff] %v482_v53  ;;  %v259_v53 = vld [vmem:[%s1308_s28 + $0x2d0] sm:$0xff]  ;;  %v515_v56 = vmul.f32 %v1315_v1, %v258_v51 }
  0x6d   : > { %739 = vst [vmem:[%s1327_s21 + $0x1c8] sm:$0xff] %v483_v55  ;;  %v260_v55 = vld [vmem:[%s1308_s28 + $0x2d8] sm:$0xff]  ;;  %v516_v58 = vmul.f32 %v1315_v1, %v259_v53 }
  0x6e   : > { %740 = vst [vmem:[%s1327_s21 + $0x1d0] sm:$0xff] %v484_v57  ;;  %v261_v57 = vld [vmem:[%s1308_s28 + $0x2e0] sm:$0xff]  ;;  %v517_v60 = vmul.f32 %v1315_v1, %v260_v55 }
  0x6f   : > { %741 = vst [vmem:[%s1327_s21 + $0x1d8] sm:$0xff] %v485_v59  ;;  %v262_v59 = vld [vmem:[%s1308_s28 + $0x2e8] sm:$0xff]  ;;  %v518_v62 = vmul.f32 %v1315_v1, %v261_v57 }
  0x70   : > { %742 = vst [vmem:[%s1327_s21 + $0x1e0] sm:$0xff] %v486_v61  ;;  %v263_v61 = vld [vmem:[%s1308_s28 + $0x2f0] sm:$0xff]  ;;  %v519_v0 = vmul.f32 %v1315_v1, %v262_v59 }
  0x71   : > { %743 = vst [vmem:[%s1327_s21 + $0x1e8] sm:$0xff] %v487_v63  ;;  %v264_v63 = vld [vmem:[%s1308_s28 + $0x2f8] sm:$0xff]  ;;  %v520_v3 = vmul.f32 %v1315_v1, %v263_v61 }
  0x72   : > { %744 = vst [vmem:[%s1327_s21 + $0x1f0] sm:$0xff] %v488_v2  ;;  %v265_v2 = vld [vmem:[%s1308_s28 + $0x300] sm:$0xff]  ;;  %v521_v5 = vmul.f32 %v1315_v1, %v264_v63 }
  0x73   : > { %745 = vst [vmem:[%s1327_s21 + $0x1f8] sm:$0xff] %v489_v4  ;;  %v266_v4 = vld [vmem:[%s1308_s28 + $0x308] sm:$0xff]  ;;  %v522_v7 = vmul.f32 %v1315_v1, %v265_v2 }
  0x74   : > { %746 = vst [vmem:[%s1327_s21 + $0x200] sm:$0xff] %v490_v6  ;;  %v267_v6 = vld [vmem:[%s1308_s28 + $0x310] sm:$0xff]  ;;  %v523_v9 = vmul.f32 %v1315_v1, %v266_v4 }
  0x75   : > { %747 = vst [vmem:[%s1327_s21 + $0x208] sm:$0xff] %v491_v8  ;;  %v268_v8 = vld [vmem:[%s1308_s28 + $0x318] sm:$0xff]  ;;  %v524_v11 = vmul.f32 %v1315_v1, %v267_v6 }
  0x76   : > { %748 = vst [vmem:[%s1327_s21 + $0x210] sm:$0xff] %v492_v10  ;;  %v269_v10 = vld [vmem:[%s1308_s28 + $0x320] sm:$0xff]  ;;  %v525_v13 = vmul.f32 %v1315_v1, %v268_v8 }
  0x77   : > { %749 = vst [vmem:[%s1327_s21 + $0x218] sm:$0xff] %v493_v12  ;;  %v270_v12 = vld [vmem:[%s1308_s28 + $0x328] sm:$0xff]  ;;  %v526_v15 = vmul.f32 %v1315_v1, %v269_v10 }
  0x78   : > { %750 = vst [vmem:[%s1327_s21 + $0x220] sm:$0xff] %v494_v14  ;;  %v271_v14 = vld [vmem:[%s1308_s28 + $0x330] sm:$0xff]  ;;  %v527_v17 = vmul.f32 %v1315_v1, %v270_v12 }
  0x79   : > { %751 = vst [vmem:[%s1327_s21 + $0x228] sm:$0xff] %v495_v16  ;;  %v272_v16 = vld [vmem:[%s1308_s28 + $0x338] sm:$0xff]  ;;  %v528_v19 = vmul.f32 %v1315_v1, %v271_v14 }
  0x7a   : > { %752 = vst [vmem:[%s1327_s21 + $0x230] sm:$0xff] %v496_v18  ;;  %v273_v18 = vld [vmem:[%s1308_s28 + $0x340] sm:$0xff]  ;;  %v529_v21 = vmul.f32 %v1315_v1, %v272_v16 }
  0x7b   : > { %753 = vst [vmem:[%s1327_s21 + $0x238] sm:$0xff] %v497_v20  ;;  %v274_v20 = vld [vmem:[%s1308_s28 + $0x348] sm:$0xff]  ;;  %v530_v23 = vmul.f32 %v1315_v1, %v273_v18 }
  0x7c   : > { %754 = vst [vmem:[%s1327_s21 + $0x240] sm:$0xff] %v498_v22  ;;  %v275_v22 = vld [vmem:[%s1308_s28 + $0x350] sm:$0xff]  ;;  %v531_v25 = vmul.f32 %v1315_v1, %v274_v20 }
  0x7d   : > { %755 = vst [vmem:[%s1327_s21 + $0x248] sm:$0xff] %v499_v24  ;;  %v276_v24 = vld [vmem:[%s1308_s28 + $0x358] sm:$0xff]  ;;  %v532_v27 = vmul.f32 %v1315_v1, %v275_v22 }
  0x7e   : > { %756 = vst [vmem:[%s1327_s21 + $0x250] sm:$0xff] %v500_v26  ;;  %v277_v26 = vld [vmem:[%s1308_s28 + $0x360] sm:$0xff]  ;;  %v533_v29 = vmul.f32 %v1315_v1, %v276_v24 }
  0x7f   : > { %757 = vst [vmem:[%s1327_s21 + $0x258] sm:$0xff] %v501_v28  ;;  %v278_v28 = vld [vmem:[%s1308_s28 + $0x368] sm:$0xff]  ;;  %v534_v31 = vmul.f32 %v1315_v1, %v277_v26 }
  0x80   : > { %758 = vst [vmem:[%s1327_s21 + $0x260] sm:$0xff] %v502_v30  ;;  %v279_v30 = vld [vmem:[%s1308_s28 + $0x370] sm:$0xff]  ;;  %v535_v33 = vmul.f32 %v1315_v1, %v278_v28 }
  0x81   : > { %759 = vst [vmem:[%s1327_s21 + $0x268] sm:$0xff] %v503_v32  ;;  %v280_v32 = vld [vmem:[%s1308_s28 + $0x378] sm:$0xff]  ;;  %v536_v35 = vmul.f32 %v1315_v1, %v279_v30 }
  0x82   : > { %760 = vst [vmem:[%s1327_s21 + $0x270] sm:$0xff] %v504_v34  ;;  %v281_v34 = vld [vmem:[%s1308_s28 + $0x380] sm:$0xff]  ;;  %v537_v37 = vmul.f32 %v1315_v1, %v280_v32 }
  0x83   : > { %761 = vst [vmem:[%s1327_s21 + $0x278] sm:$0xff] %v505_v36  ;;  %v282_v36 = vld [vmem:[%s1308_s28 + $0x388] sm:$0xff]  ;;  %v538_v39 = vmul.f32 %v1315_v1, %v281_v34 }
  0x84   : > { %762 = vst [vmem:[%s1327_s21 + $0x280] sm:$0xff] %v506_v38  ;;  %v283_v38 = vld [vmem:[%s1308_s28 + $0x390] sm:$0xff]  ;;  %v539_v41 = vmul.f32 %v1315_v1, %v282_v36 }
  0x85   : > { %763 = vst [vmem:[%s1327_s21 + $0x288] sm:$0xff] %v507_v40  ;;  %v284_v40 = vld [vmem:[%s1308_s28 + $0x398] sm:$0xff]  ;;  %v540_v43 = vmul.f32 %v1315_v1, %v283_v38 }
  0x86   : > { %764 = vst [vmem:[%s1327_s21 + $0x290] sm:$0xff] %v508_v42  ;;  %v285_v42 = vld [vmem:[%s1308_s28 + $0x3a0] sm:$0xff]  ;;  %v541_v45 = vmul.f32 %v1315_v1, %v284_v40 }
  0x87   : > { %765 = vst [vmem:[%s1327_s21 + $0x298] sm:$0xff] %v509_v44  ;;  %v286_v44 = vld [vmem:[%s1308_s28 + $0x3a8] sm:$0xff]  ;;  %v542_v47 = vmul.f32 %v1315_v1, %v285_v42 }
  0x88   : > { %766 = vst [vmem:[%s1327_s21 + $0x2a0] sm:$0xff] %v510_v46  ;;  %v287_v46 = vld [vmem:[%s1308_s28 + $0x3b0] sm:$0xff]  ;;  %v543_v49 = vmul.f32 %v1315_v1, %v286_v44 }
  0x89   : > { %767 = vst [vmem:[%s1327_s21 + $0x2a8] sm:$0xff] %v511_v48  ;;  %v288_v48 = vld [vmem:[%s1308_s28 + $0x3b8] sm:$0xff]  ;;  %v544_v51 = vmul.f32 %v1315_v1, %v287_v46 }
  0x8a   : > { %768 = vst [vmem:[%s1327_s21 + $0x2b0] sm:$0xff] %v512_v50  ;;  %v289_v50 = vld [vmem:[%s1308_s28 + $0x3c0] sm:$0xff]  ;;  %v545_v53 = vmul.f32 %v1315_v1, %v288_v48 }
  0x8b   : > { %769 = vst [vmem:[%s1327_s21 + $0x2b8] sm:$0xff] %v513_v52  ;;  %v290_v52 = vld [vmem:[%s1308_s28 + $0x3c8] sm:$0xff]  ;;  %v546_v55 = vmul.f32 %v1315_v1, %v289_v50 }
  0x8c   : > { %770 = vst [vmem:[%s1327_s21 + $0x2c0] sm:$0xff] %v514_v54  ;;  %v291_v54 = vld [vmem:[%s1308_s28 + $0x3d0] sm:$0xff]  ;;  %v547_v57 = vmul.f32 %v1315_v1, %v290_v52 }
  0x8d   : > { %771 = vst [vmem:[%s1327_s21 + $0x2c8] sm:$0xff] %v515_v56  ;;  %v292_v56 = vld [vmem:[%s1308_s28 + $0x3d8] sm:$0xff]  ;;  %v548_v59 = vmul.f32 %v1315_v1, %v291_v54 }
  0x8e   : > { %772 = vst [vmem:[%s1327_s21 + $0x2d0] sm:$0xff] %v516_v58  ;;  %v293_v58 = vld [vmem:[%s1308_s28 + $0x3e0] sm:$0xff]  ;;  %v549_v61 = vmul.f32 %v1315_v1, %v292_v56 }
  0x8f   : > { %773 = vst [vmem:[%s1327_s21 + $0x2d8] sm:$0xff] %v517_v60  ;;  %v294_v60 = vld [vmem:[%s1308_s28 + $0x3e8] sm:$0xff]  ;;  %v550_v63 = vmul.f32 %v1315_v1, %v293_v58 }
  0x90   : > { %774 = vst [vmem:[%s1327_s21 + $0x2e0] sm:$0xff] %v518_v62  ;;  %v295_v62 = vld [vmem:[%s1308_s28 + $0x3f0] sm:$0xff]  ;;  %v551_v2 = vmul.f32 %v1315_v1, %v294_v60 }
  0x91   : > { %775 = vst [vmem:[%s1327_s21 + $0x2e8] sm:$0xff] %v519_v0  ;;  %v296_v0 = vld [vmem:[%s1308_s28 + $0x3f8] sm:$0xff]  ;;  %v552_v4 = vmul.f32 %v1315_v1, %v295_v62 }
  0x92   : > { %776 = vst [vmem:[%s1327_s21 + $0x2f0] sm:$0xff] %v520_v3  ;;  %v297_v3 = vld [vmem:[%s1308_s28 + $0x400] sm:$0xff]  ;;  %v553_v6 = vmul.f32 %v1315_v1, %v296_v0 }
  0x93   : > { %777 = vst [vmem:[%s1327_s21 + $0x2f8] sm:$0xff] %v521_v5  ;;  %v298_v5 = vld [vmem:[%s1308_s28 + $0x408] sm:$0xff]  ;;  %v554_v8 = vmul.f32 %v1315_v1, %v297_v3 }
  0x94   : > { %778 = vst [vmem:[%s1327_s21 + $0x300] sm:$0xff] %v522_v7  ;;  %v299_v7 = vld [vmem:[%s1308_s28 + $0x410] sm:$0xff]  ;;  %v555_v10 = vmul.f32 %v1315_v1, %v298_v5 }
  0x95   : > { %779 = vst [vmem:[%s1327_s21 + $0x308] sm:$0xff] %v523_v9  ;;  %v300_v9 = vld [vmem:[%s1308_s28 + $0x418] sm:$0xff]  ;;  %v556_v12 = vmul.f32 %v1315_v1, %v299_v7 }
  0x96   : > { %780 = vst [vmem:[%s1327_s21 + $0x310] sm:$0xff] %v524_v11  ;;  %v301_v11 = vld [vmem:[%s1308_s28 + $0x420] sm:$0xff]  ;;  %v557_v14 = vmul.f32 %v1315_v1, %v300_v9 }
  0x97   : > { %781 = vst [vmem:[%s1327_s21 + $0x318] sm:$0xff] %v525_v13  ;;  %v302_v13 = vld [vmem:[%s1308_s28 + $0x428] sm:$0xff]  ;;  %v558_v16 = vmul.f32 %v1315_v1, %v301_v11 }
  0x98   : > { %782 = vst [vmem:[%s1327_s21 + $0x320] sm:$0xff] %v526_v15  ;;  %v303_v15 = vld [vmem:[%s1308_s28 + $0x430] sm:$0xff]  ;;  %v559_v18 = vmul.f32 %v1315_v1, %v302_v13 }
  0x99   : > { %783 = vst [vmem:[%s1327_s21 + $0x328] sm:$0xff] %v527_v17  ;;  %v304_v17 = vld [vmem:[%s1308_s28 + $0x438] sm:$0xff]  ;;  %v560_v20 = vmul.f32 %v1315_v1, %v303_v15 }
  0x9a   : > { %784 = vst [vmem:[%s1327_s21 + $0x330] sm:$0xff] %v528_v19  ;;  %v305_v19 = vld [vmem:[%s1308_s28 + $0x440] sm:$0xff]  ;;  %v561_v22 = vmul.f32 %v1315_v1, %v304_v17 }
  0x9b   : > { %785 = vst [vmem:[%s1327_s21 + $0x338] sm:$0xff] %v529_v21  ;;  %v306_v21 = vld [vmem:[%s1308_s28 + $0x448] sm:$0xff]  ;;  %v562_v24 = vmul.f32 %v1315_v1, %v305_v19 }
  0x9c   : > { %786 = vst [vmem:[%s1327_s21 + $0x340] sm:$0xff] %v530_v23  ;;  %v307_v23 = vld [vmem:[%s1308_s28 + $0x450] sm:$0xff]  ;;  %v563_v26 = vmul.f32 %v1315_v1, %v306_v21 }
  0x9d   : > { %787 = vst [vmem:[%s1327_s21 + $0x348] sm:$0xff] %v531_v25  ;;  %v308_v25 = vld [vmem:[%s1308_s28 + $0x458] sm:$0xff]  ;;  %v564_v28 = vmul.f32 %v1315_v1, %v307_v23 }
  0x9e   : > { %788 = vst [vmem:[%s1327_s21 + $0x350] sm:$0xff] %v532_v27  ;;  %v309_v27 = vld [vmem:[%s1308_s28 + $0x460] sm:$0xff]  ;;  %v565_v30 = vmul.f32 %v1315_v1, %v308_v25 }
  0x9f   : > { %789 = vst [vmem:[%s1327_s21 + $0x358] sm:$0xff] %v533_v29  ;;  %v310_v29 = vld [vmem:[%s1308_s28 + $0x468] sm:$0xff]  ;;  %v566_v32 = vmul.f32 %v1315_v1, %v309_v27 }
  0xa0   : > { %790 = vst [vmem:[%s1327_s21 + $0x360] sm:$0xff] %v534_v31  ;;  %v311_v31 = vld [vmem:[%s1308_s28 + $0x470] sm:$0xff]  ;;  %v567_v34 = vmul.f32 %v1315_v1, %v310_v29 }
  0xa1   : > { %791 = vst [vmem:[%s1327_s21 + $0x368] sm:$0xff] %v535_v33  ;;  %v312_v33 = vld [vmem:[%s1308_s28 + $0x478] sm:$0xff]  ;;  %v568_v36 = vmul.f32 %v1315_v1, %v311_v31 }
  0xa2   : > { %792 = vst [vmem:[%s1327_s21 + $0x370] sm:$0xff] %v536_v35  ;;  %v313_v35 = vld [vmem:[%s1308_s28 + $0x480] sm:$0xff]  ;;  %v569_v38 = vmul.f32 %v1315_v1, %v312_v33 }
  0xa3   : > { %793 = vst [vmem:[%s1327_s21 + $0x378] sm:$0xff] %v537_v37  ;;  %v314_v37 = vld [vmem:[%s1308_s28 + $0x488] sm:$0xff]  ;;  %v570_v40 = vmul.f32 %v1315_v1, %v313_v35 }
  0xa4   : > { %794 = vst [vmem:[%s1327_s21 + $0x380] sm:$0xff] %v538_v39  ;;  %v315_v39 = vld [vmem:[%s1308_s28 + $0x490] sm:$0xff]  ;;  %v571_v42 = vmul.f32 %v1315_v1, %v314_v37 }
  0xa5   : > { %795 = vst [vmem:[%s1327_s21 + $0x388] sm:$0xff] %v539_v41  ;;  %v316_v41 = vld [vmem:[%s1308_s28 + $0x498] sm:$0xff]  ;;  %v572_v44 = vmul.f32 %v1315_v1, %v315_v39 }
  0xa6   : > { %796 = vst [vmem:[%s1327_s21 + $0x390] sm:$0xff] %v540_v43  ;;  %v317_v43 = vld [vmem:[%s1308_s28 + $0x4a0] sm:$0xff]  ;;  %v573_v46 = vmul.f32 %v1315_v1, %v316_v41 }
  0xa7   : > { %797 = vst [vmem:[%s1327_s21 + $0x398] sm:$0xff] %v541_v45  ;;  %v318_v45 = vld [vmem:[%s1308_s28 + $0x4a8] sm:$0xff]  ;;  %v574_v48 = vmul.f32 %v1315_v1, %v317_v43 }
  0xa8   : > { %798 = vst [vmem:[%s1327_s21 + $0x3a0] sm:$0xff] %v542_v47  ;;  %v319_v47 = vld [vmem:[%s1308_s28 + $0x4b0] sm:$0xff]  ;;  %v575_v50 = vmul.f32 %v1315_v1, %v318_v45 }
  0xa9   : > { %799 = vst [vmem:[%s1327_s21 + $0x3a8] sm:$0xff] %v543_v49  ;;  %v320_v49 = vld [vmem:[%s1308_s28 + $0x4b8] sm:$0xff]  ;;  %v576_v52 = vmul.f32 %v1315_v1, %v319_v47 }
  0xaa   : > { %800 = vst [vmem:[%s1327_s21 + $0x3b0] sm:$0xff] %v544_v51  ;;  %v321_v51 = vld [vmem:[%s1308_s28 + $0x4c0] sm:$0xff]  ;;  %v577_v54 = vmul.f32 %v1315_v1, %v320_v49 }
  0xab   : > { %801 = vst [vmem:[%s1327_s21 + $0x3b8] sm:$0xff] %v545_v53  ;;  %v322_v53 = vld [vmem:[%s1308_s28 + $0x4c8] sm:$0xff]  ;;  %v578_v56 = vmul.f32 %v1315_v1, %v321_v51 }
  0xac   : > { %802 = vst [vmem:[%s1327_s21 + $0x3c0] sm:$0xff] %v546_v55  ;;  %v323_v55 = vld [vmem:[%s1308_s28 + $0x4d0] sm:$0xff]  ;;  %v579_v58 = vmul.f32 %v1315_v1, %v322_v53 }
  0xad   : > { %803 = vst [vmem:[%s1327_s21 + $0x3c8] sm:$0xff] %v547_v57  ;;  %v324_v57 = vld [vmem:[%s1308_s28 + $0x4d8] sm:$0xff]  ;;  %v580_v60 = vmul.f32 %v1315_v1, %v323_v55 }
  0xae   : > { %804 = vst [vmem:[%s1327_s21 + $0x3d0] sm:$0xff] %v548_v59  ;;  %v325_v59 = vld [vmem:[%s1308_s28 + $0x4e0] sm:$0xff]  ;;  %v581_v62 = vmul.f32 %v1315_v1, %v324_v57 }
  0xaf   : > { %805 = vst [vmem:[%s1327_s21 + $0x3d8] sm:$0xff] %v549_v61  ;;  %v326_v61 = vld [vmem:[%s1308_s28 + $0x4e8] sm:$0xff]  ;;  %v582_v0 = vmul.f32 %v1315_v1, %v325_v59 }
  0xb0   : > { %806 = vst [vmem:[%s1327_s21 + $0x3e0] sm:$0xff] %v550_v63  ;;  %v327_v63 = vld [vmem:[%s1308_s28 + $0x4f0] sm:$0xff]  ;;  %v583_v3 = vmul.f32 %v1315_v1, %v326_v61 }
  0xb1   : > { %807 = vst [vmem:[%s1327_s21 + $0x3e8] sm:$0xff] %v551_v2  ;;  %v328_v2 = vld [vmem:[%s1308_s28 + $0x4f8] sm:$0xff]  ;;  %v584_v5 = vmul.f32 %v1315_v1, %v327_v63 }
  0xb2   : > { %808 = vst [vmem:[%s1327_s21 + $0x3f0] sm:$0xff] %v552_v4  ;;  %v329_v4 = vld [vmem:[%s1308_s28 + $0x500] sm:$0xff]  ;;  %v585_v7 = vmul.f32 %v1315_v1, %v328_v2 }
  0xb3   : > { %809 = vst [vmem:[%s1327_s21 + $0x3f8] sm:$0xff] %v553_v6  ;;  %v330_v6 = vld [vmem:[%s1308_s28 + $0x508] sm:$0xff]  ;;  %v586_v9 = vmul.f32 %v1315_v1, %v329_v4 }
  0xb4   : > { %810 = vst [vmem:[%s1327_s21 + $0x400] sm:$0xff] %v554_v8  ;;  %v331_v8 = vld [vmem:[%s1308_s28 + $0x510] sm:$0xff]  ;;  %v587_v11 = vmul.f32 %v1315_v1, %v330_v6 }
  0xb5   : > { %811 = vst [vmem:[%s1327_s21 + $0x408] sm:$0xff] %v555_v10  ;;  %v332_v10 = vld [vmem:[%s1308_s28 + $0x518] sm:$0xff]  ;;  %v588_v13 = vmul.f32 %v1315_v1, %v331_v8 }
  0xb6   : > { %812 = vst [vmem:[%s1327_s21 + $0x410] sm:$0xff] %v556_v12  ;;  %v333_v12 = vld [vmem:[%s1308_s28 + $0x520] sm:$0xff]  ;;  %v589_v15 = vmul.f32 %v1315_v1, %v332_v10 }
  0xb7   : > { %813 = vst [vmem:[%s1327_s21 + $0x418] sm:$0xff] %v557_v14  ;;  %v334_v14 = vld [vmem:[%s1308_s28 + $0x528] sm:$0xff]  ;;  %v590_v17 = vmul.f32 %v1315_v1, %v333_v12 }
  0xb8   : > { %814 = vst [vmem:[%s1327_s21 + $0x420] sm:$0xff] %v558_v16  ;;  %v335_v16 = vld [vmem:[%s1308_s28 + $0x530] sm:$0xff]  ;;  %v591_v19 = vmul.f32 %v1315_v1, %v334_v14 }
  0xb9   : > { %815 = vst [vmem:[%s1327_s21 + $0x428] sm:$0xff] %v559_v18  ;;  %v336_v18 = vld [vmem:[%s1308_s28 + $0x538] sm:$0xff]  ;;  %v592_v21 = vmul.f32 %v1315_v1, %v335_v16 }
  0xba   : > { %816 = vst [vmem:[%s1327_s21 + $0x430] sm:$0xff] %v560_v20  ;;  %v337_v20 = vld [vmem:[%s1308_s28 + $0x540] sm:$0xff]  ;;  %v593_v23 = vmul.f32 %v1315_v1, %v336_v18 }
  0xbb   : > { %817 = vst [vmem:[%s1327_s21 + $0x438] sm:$0xff] %v561_v22  ;;  %v338_v22 = vld [vmem:[%s1308_s28 + $0x548] sm:$0xff]  ;;  %v594_v25 = vmul.f32 %v1315_v1, %v337_v20 }
  0xbc   : > { %818 = vst [vmem:[%s1327_s21 + $0x440] sm:$0xff] %v562_v24  ;;  %v339_v24 = vld [vmem:[%s1308_s28 + $0x550] sm:$0xff]  ;;  %v595_v27 = vmul.f32 %v1315_v1, %v338_v22 }
  0xbd   : > { %819 = vst [vmem:[%s1327_s21 + $0x448] sm:$0xff] %v563_v26  ;;  %v340_v26 = vld [vmem:[%s1308_s28 + $0x558] sm:$0xff]  ;;  %v596_v29 = vmul.f32 %v1315_v1, %v339_v24 }
  0xbe   : > { %820 = vst [vmem:[%s1327_s21 + $0x450] sm:$0xff] %v564_v28  ;;  %v341_v28 = vld [vmem:[%s1308_s28 + $0x560] sm:$0xff]  ;;  %v597_v31 = vmul.f32 %v1315_v1, %v340_v26 }
  0xbf   : > { %821 = vst [vmem:[%s1327_s21 + $0x458] sm:$0xff] %v565_v30  ;;  %v342_v30 = vld [vmem:[%s1308_s28 + $0x568] sm:$0xff]  ;;  %v598_v33 = vmul.f32 %v1315_v1, %v341_v28 }
  0xc0   : > { %822 = vst [vmem:[%s1327_s21 + $0x460] sm:$0xff] %v566_v32  ;;  %v343_v32 = vld [vmem:[%s1308_s28 + $0x570] sm:$0xff]  ;;  %v599_v35 = vmul.f32 %v1315_v1, %v342_v30 }
  0xc1   : > { %823 = vst [vmem:[%s1327_s21 + $0x468] sm:$0xff] %v567_v34  ;;  %v344_v34 = vld [vmem:[%s1308_s28 + $0x578] sm:$0xff]  ;;  %v600_v37 = vmul.f32 %v1315_v1, %v343_v32 }
  0xc2   : > { %824 = vst [vmem:[%s1327_s21 + $0x470] sm:$0xff] %v568_v36  ;;  %v345_v36 = vld [vmem:[%s1308_s28 + $0x580] sm:$0xff]  ;;  %v601_v39 = vmul.f32 %v1315_v1, %v344_v34 }
  0xc3   : > { %825 = vst [vmem:[%s1327_s21 + $0x478] sm:$0xff] %v569_v38  ;;  %v346_v38 = vld [vmem:[%s1308_s28 + $0x588] sm:$0xff]  ;;  %v602_v41 = vmul.f32 %v1315_v1, %v345_v36 }
  0xc4   : > { %826 = vst [vmem:[%s1327_s21 + $0x480] sm:$0xff] %v570_v40  ;;  %v347_v40 = vld [vmem:[%s1308_s28 + $0x590] sm:$0xff]  ;;  %v603_v43 = vmul.f32 %v1315_v1, %v346_v38 }
  0xc5   : > { %827 = vst [vmem:[%s1327_s21 + $0x488] sm:$0xff] %v571_v42  ;;  %v348_v42 = vld [vmem:[%s1308_s28 + $0x598] sm:$0xff]  ;;  %v604_v45 = vmul.f32 %v1315_v1, %v347_v40 }
  0xc6   : > { %828 = vst [vmem:[%s1327_s21 + $0x490] sm:$0xff] %v572_v44  ;;  %v349_v44 = vld [vmem:[%s1308_s28 + $0x5a0] sm:$0xff]  ;;  %v605_v47 = vmul.f32 %v1315_v1, %v348_v42 }
  0xc7   : > { %829 = vst [vmem:[%s1327_s21 + $0x498] sm:$0xff] %v573_v46  ;;  %v350_v46 = vld [vmem:[%s1308_s28 + $0x5a8] sm:$0xff]  ;;  %v606_v49 = vmul.f32 %v1315_v1, %v349_v44 }
  0xc8   : > { %830 = vst [vmem:[%s1327_s21 + $0x4a0] sm:$0xff] %v574_v48  ;;  %v351_v48 = vld [vmem:[%s1308_s28 + $0x5b0] sm:$0xff]  ;;  %v607_v51 = vmul.f32 %v1315_v1, %v350_v46 }
  0xc9   : > { %831 = vst [vmem:[%s1327_s21 + $0x4a8] sm:$0xff] %v575_v50  ;;  %v352_v50 = vld [vmem:[%s1308_s28 + $0x5b8] sm:$0xff]  ;;  %v608_v53 = vmul.f32 %v1315_v1, %v351_v48 }
  0xca   : > { %832 = vst [vmem:[%s1327_s21 + $0x4b0] sm:$0xff] %v576_v52  ;;  %v353_v52 = vld [vmem:[%s1308_s28 + $0x5c0] sm:$0xff]  ;;  %v609_v55 = vmul.f32 %v1315_v1, %v352_v50 }
  0xcb   : > { %833 = vst [vmem:[%s1327_s21 + $0x4b8] sm:$0xff] %v577_v54  ;;  %v354_v54 = vld [vmem:[%s1308_s28 + $0x5c8] sm:$0xff]  ;;  %v610_v57 = vmul.f32 %v1315_v1, %v353_v52 }
  0xcc   : > { %834 = vst [vmem:[%s1327_s21 + $0x4c0] sm:$0xff] %v578_v56  ;;  %v355_v56 = vld [vmem:[%s1308_s28 + $0x5d0] sm:$0xff]  ;;  %v611_v59 = vmul.f32 %v1315_v1, %v354_v54 }
  0xcd   : > { %835 = vst [vmem:[%s1327_s21 + $0x4c8] sm:$0xff] %v579_v58  ;;  %v356_v58 = vld [vmem:[%s1308_s28 + $0x5d8] sm:$0xff]  ;;  %v612_v61 = vmul.f32 %v1315_v1, %v355_v56 }
  0xce   : > { %836 = vst [vmem:[%s1327_s21 + $0x4d0] sm:$0xff] %v580_v60  ;;  %v357_v60 = vld [vmem:[%s1308_s28 + $0x5e0] sm:$0xff]  ;;  %v613_v63 = vmul.f32 %v1315_v1, %v356_v58 }
  0xcf   : > { %837 = vst [vmem:[%s1327_s21 + $0x4d8] sm:$0xff] %v581_v62  ;;  %v358_v62 = vld [vmem:[%s1308_s28 + $0x5e8] sm:$0xff]  ;;  %v614_v2 = vmul.f32 %v1315_v1, %v357_v60 }
  0xd0   : > { %838 = vst [vmem:[%s1327_s21 + $0x4e0] sm:$0xff] %v582_v0  ;;  %v359_v0 = vld [vmem:[%s1308_s28 + $0x5f0] sm:$0xff]  ;;  %v615_v4 = vmul.f32 %v1315_v1, %v358_v62 }
  0xd1   : > { %839 = vst [vmem:[%s1327_s21 + $0x4e8] sm:$0xff] %v583_v3  ;;  %v360_v3 = vld [vmem:[%s1308_s28 + $0x5f8] sm:$0xff]  ;;  %v616_v6 = vmul.f32 %v1315_v1, %v359_v0 }
  0xd2   : > { %840 = vst [vmem:[%s1327_s21 + $0x4f0] sm:$0xff] %v584_v5  ;;  %v361_v5 = vld [vmem:[%s1308_s28 + $0x600] sm:$0xff]  ;;  %v617_v8 = vmul.f32 %v1315_v1, %v360_v3 }
  0xd3   : > { %841 = vst [vmem:[%s1327_s21 + $0x4f8] sm:$0xff] %v585_v7  ;;  %v362_v7 = vld [vmem:[%s1308_s28 + $0x608] sm:$0xff]  ;;  %v618_v10 = vmul.f32 %v1315_v1, %v361_v5 }
  0xd4   : > { %842 = vst [vmem:[%s1327_s21 + $0x500] sm:$0xff] %v586_v9  ;;  %v363_v9 = vld [vmem:[%s1308_s28 + $0x610] sm:$0xff]  ;;  %v619_v12 = vmul.f32 %v1315_v1, %v362_v7 }
  0xd5   : > { %843 = vst [vmem:[%s1327_s21 + $0x508] sm:$0xff] %v587_v11  ;;  %v364_v11 = vld [vmem:[%s1308_s28 + $0x618] sm:$0xff]  ;;  %v620_v14 = vmul.f32 %v1315_v1, %v363_v9 }
  0xd6   : > { %844 = vst [vmem:[%s1327_s21 + $0x510] sm:$0xff] %v588_v13  ;;  %v365_v13 = vld [vmem:[%s1308_s28 + $0x620] sm:$0xff]  ;;  %v621_v16 = vmul.f32 %v1315_v1, %v364_v11 }
  0xd7   : > { %845 = vst [vmem:[%s1327_s21 + $0x518] sm:$0xff] %v589_v15  ;;  %v366_v15 = vld [vmem:[%s1308_s28 + $0x628] sm:$0xff]  ;;  %v622_v18 = vmul.f32 %v1315_v1, %v365_v13 }
  0xd8   : > { %846 = vst [vmem:[%s1327_s21 + $0x520] sm:$0xff] %v590_v17  ;;  %v367_v17 = vld [vmem:[%s1308_s28 + $0x630] sm:$0xff]  ;;  %v623_v20 = vmul.f32 %v1315_v1, %v366_v15 }
  0xd9   : > { %847 = vst [vmem:[%s1327_s21 + $0x528] sm:$0xff] %v591_v19  ;;  %v368_v19 = vld [vmem:[%s1308_s28 + $0x638] sm:$0xff]  ;;  %v624_v22 = vmul.f32 %v1315_v1, %v367_v17 }
  0xda   : > { %848 = vst [vmem:[%s1327_s21 + $0x530] sm:$0xff] %v592_v21  ;;  %v369_v21 = vld [vmem:[%s1308_s28 + $0x640] sm:$0xff]  ;;  %v625_v24 = vmul.f32 %v1315_v1, %v368_v19 }
  0xdb   : > { %849 = vst [vmem:[%s1327_s21 + $0x538] sm:$0xff] %v593_v23  ;;  %v370_v23 = vld [vmem:[%s1308_s28 + $0x648] sm:$0xff]  ;;  %v626_v26 = vmul.f32 %v1315_v1, %v369_v21 }
  0xdc   : > { %850 = vst [vmem:[%s1327_s21 + $0x540] sm:$0xff] %v594_v25  ;;  %v371_v25 = vld [vmem:[%s1308_s28 + $0x650] sm:$0xff]  ;;  %v627_v28 = vmul.f32 %v1315_v1, %v370_v23 }
  0xdd   : > { %851 = vst [vmem:[%s1327_s21 + $0x548] sm:$0xff] %v595_v27  ;;  %v372_v27 = vld [vmem:[%s1308_s28 + $0x658] sm:$0xff]  ;;  %v628_v30 = vmul.f32 %v1315_v1, %v371_v25 }
  0xde   : > { %852 = vst [vmem:[%s1327_s21 + $0x550] sm:$0xff] %v596_v29  ;;  %v373_v29 = vld [vmem:[%s1308_s28 + $0x660] sm:$0xff]  ;;  %v629_v32 = vmul.f32 %v1315_v1, %v372_v27 }
  0xdf   : > { %853 = vst [vmem:[%s1327_s21 + $0x558] sm:$0xff] %v597_v31  ;;  %v374_v31 = vld [vmem:[%s1308_s28 + $0x668] sm:$0xff]  ;;  %v630_v34 = vmul.f32 %v1315_v1, %v373_v29 }
  0xe0   : > { %854 = vst [vmem:[%s1327_s21 + $0x560] sm:$0xff] %v598_v33  ;;  %v375_v33 = vld [vmem:[%s1308_s28 + $0x670] sm:$0xff]  ;;  %v631_v36 = vmul.f32 %v1315_v1, %v374_v31 }
  0xe1   : > { %855 = vst [vmem:[%s1327_s21 + $0x568] sm:$0xff] %v599_v35  ;;  %v376_v35 = vld [vmem:[%s1308_s28 + $0x678] sm:$0xff]  ;;  %v632_v38 = vmul.f32 %v1315_v1, %v375_v33 }
  0xe2   : > { %856 = vst [vmem:[%s1327_s21 + $0x570] sm:$0xff] %v600_v37  ;;  %v377_v37 = vld [vmem:[%s1308_s28 + $0x680] sm:$0xff]  ;;  %v633_v40 = vmul.f32 %v1315_v1, %v376_v35 }
  0xe3   : > { %857 = vst [vmem:[%s1327_s21 + $0x578] sm:$0xff] %v601_v39  ;;  %v378_v39 = vld [vmem:[%s1308_s28 + $0x688] sm:$0xff]  ;;  %v634_v42 = vmul.f32 %v1315_v1, %v377_v37 }
  0xe4   : > { %858 = vst [vmem:[%s1327_s21 + $0x580] sm:$0xff] %v602_v41  ;;  %v379_v41 = vld [vmem:[%s1308_s28 + $0x690] sm:$0xff]  ;;  %v635_v44 = vmul.f32 %v1315_v1, %v378_v39 }
  0xe5   : > { %859 = vst [vmem:[%s1327_s21 + $0x588] sm:$0xff] %v603_v43  ;;  %v380_v43 = vld [vmem:[%s1308_s28 + $0x698] sm:$0xff]  ;;  %v636_v46 = vmul.f32 %v1315_v1, %v379_v41 }
  0xe6   : > { %860 = vst [vmem:[%s1327_s21 + $0x590] sm:$0xff] %v604_v45  ;;  %v381_v45 = vld [vmem:[%s1308_s28 + $0x6a0] sm:$0xff]  ;;  %v637_v48 = vmul.f32 %v1315_v1, %v380_v43 }
  0xe7   : > { %861 = vst [vmem:[%s1327_s21 + $0x598] sm:$0xff] %v605_v47  ;;  %v382_v47 = vld [vmem:[%s1308_s28 + $0x6a8] sm:$0xff]  ;;  %v638_v50 = vmul.f32 %v1315_v1, %v381_v45 }
  0xe8   : > { %862 = vst [vmem:[%s1327_s21 + $0x5a0] sm:$0xff] %v606_v49  ;;  %v383_v49 = vld [vmem:[%s1308_s28 + $0x6b0] sm:$0xff]  ;;  %v639_v52 = vmul.f32 %v1315_v1, %v382_v47 }
  0xe9   : > { %863 = vst [vmem:[%s1327_s21 + $0x5a8] sm:$0xff] %v607_v51  ;;  %v384_v51 = vld [vmem:[%s1308_s28 + $0x6b8] sm:$0xff]  ;;  %v640_v54 = vmul.f32 %v1315_v1, %v383_v49 }
  0xea   : > { %864 = vst [vmem:[%s1327_s21 + $0x5b0] sm:$0xff] %v608_v53  ;;  %v385_v53 = vld [vmem:[%s1308_s28 + $0x6c0] sm:$0xff]  ;;  %v641_v56 = vmul.f32 %v1315_v1, %v384_v51 }
  0xeb   : > { %865 = vst [vmem:[%s1327_s21 + $0x5b8] sm:$0xff] %v609_v55  ;;  %v386_v55 = vld [vmem:[%s1308_s28 + $0x6c8] sm:$0xff]  ;;  %v642_v58 = vmul.f32 %v1315_v1, %v385_v53 }
  0xec   : > { %866 = vst [vmem:[%s1327_s21 + $0x5c0] sm:$0xff] %v610_v57  ;;  %v387_v57 = vld [vmem:[%s1308_s28 + $0x6d0] sm:$0xff]  ;;  %v643_v60 = vmul.f32 %v1315_v1, %v386_v55 }
  0xed   : > { %867 = vst [vmem:[%s1327_s21 + $0x5c8] sm:$0xff] %v611_v59  ;;  %v388_v59 = vld [vmem:[%s1308_s28 + $0x6d8] sm:$0xff]  ;;  %v644_v62 = vmul.f32 %v1315_v1, %v387_v57 }
  0xee   : > { %868 = vst [vmem:[%s1327_s21 + $0x5d0] sm:$0xff] %v612_v61  ;;  %v389_v61 = vld [vmem:[%s1308_s28 + $0x6e0] sm:$0xff]  ;;  %v645_v0 = vmul.f32 %v1315_v1, %v388_v59 }
  0xef   : > { %869 = vst [vmem:[%s1327_s21 + $0x5d8] sm:$0xff] %v613_v63  ;;  %v390_v63 = vld [vmem:[%s1308_s28 + $0x6e8] sm:$0xff]  ;;  %v646_v3 = vmul.f32 %v1315_v1, %v389_v61 }
  0xf0   : > { %870 = vst [vmem:[%s1327_s21 + $0x5e0] sm:$0xff] %v614_v2  ;;  %v391_v2 = vld [vmem:[%s1308_s28 + $0x6f0] sm:$0xff]  ;;  %v647_v5 = vmul.f32 %v1315_v1, %v390_v63 }
  0xf1   : > { %871 = vst [vmem:[%s1327_s21 + $0x5e8] sm:$0xff] %v615_v4  ;;  %v392_v4 = vld [vmem:[%s1308_s28 + $0x6f8] sm:$0xff]  ;;  %v648_v7 = vmul.f32 %v1315_v1, %v391_v2 }
  0xf2   : > { %872 = vst [vmem:[%s1327_s21 + $0x5f0] sm:$0xff] %v616_v6  ;;  %v393_v6 = vld [vmem:[%s1308_s28 + $0x700] sm:$0xff]  ;;  %v649_v9 = vmul.f32 %v1315_v1, %v392_v4 }
  0xf3   : > { %873 = vst [vmem:[%s1327_s21 + $0x5f8] sm:$0xff] %v617_v8  ;;  %v394_v8 = vld [vmem:[%s1308_s28 + $0x708] sm:$0xff]  ;;  %v650_v11 = vmul.f32 %v1315_v1, %v393_v6 }
  0xf4   : > { %874 = vst [vmem:[%s1327_s21 + $0x600] sm:$0xff] %v618_v10  ;;  %v395_v10 = vld [vmem:[%s1308_s28 + $0x710] sm:$0xff]  ;;  %v651_v13 = vmul.f32 %v1315_v1, %v394_v8 }
  0xf5   : > { %875 = vst [vmem:[%s1327_s21 + $0x608] sm:$0xff] %v619_v12  ;;  %v396_v12 = vld [vmem:[%s1308_s28 + $0x718] sm:$0xff]  ;;  %v652_v15 = vmul.f32 %v1315_v1, %v395_v10 }
  0xf6   : > { %876 = vst [vmem:[%s1327_s21 + $0x610] sm:$0xff] %v620_v14  ;;  %v397_v14 = vld [vmem:[%s1308_s28 + $0x720] sm:$0xff]  ;;  %v653_v17 = vmul.f32 %v1315_v1, %v396_v12 }
  0xf7   : > { %877 = vst [vmem:[%s1327_s21 + $0x618] sm:$0xff] %v621_v16  ;;  %v398_v16 = vld [vmem:[%s1308_s28 + $0x728] sm:$0xff]  ;;  %v654_v19 = vmul.f32 %v1315_v1, %v397_v14 }
  0xf8   : > { %878 = vst [vmem:[%s1327_s21 + $0x620] sm:$0xff] %v622_v18  ;;  %v399_v18 = vld [vmem:[%s1308_s28 + $0x730] sm:$0xff]  ;;  %v655_v21 = vmul.f32 %v1315_v1, %v398_v16 }
  0xf9   : > { %879 = vst [vmem:[%s1327_s21 + $0x628] sm:$0xff] %v623_v20  ;;  %v400_v20 = vld [vmem:[%s1308_s28 + $0x738] sm:$0xff]  ;;  %v656_v23 = vmul.f32 %v1315_v1, %v399_v18 }
  0xfa   : > { %880 = vst [vmem:[%s1327_s21 + $0x630] sm:$0xff] %v624_v22  ;;  %v401_v22 = vld [vmem:[%s1308_s28 + $0x740] sm:$0xff]  ;;  %v657_v25 = vmul.f32 %v1315_v1, %v400_v20 }
  0xfb   : > { %881 = vst [vmem:[%s1327_s21 + $0x638] sm:$0xff] %v625_v24  ;;  %v402_v24 = vld [vmem:[%s1308_s28 + $0x748] sm:$0xff]  ;;  %v658_v27 = vmul.f32 %v1315_v1, %v401_v22 }
  0xfc   : > { %882 = vst [vmem:[%s1327_s21 + $0x640] sm:$0xff] %v626_v26  ;;  %v403_v26 = vld [vmem:[%s1308_s28 + $0x750] sm:$0xff]  ;;  %v659_v29 = vmul.f32 %v1315_v1, %v402_v24 }
  0xfd   : > { %883 = vst [vmem:[%s1327_s21 + $0x648] sm:$0xff] %v627_v28  ;;  %v404_v28 = vld [vmem:[%s1308_s28 + $0x758] sm:$0xff]  ;;  %v660_v31 = vmul.f32 %v1315_v1, %v403_v26 }
  0xfe   : > { %884 = vst [vmem:[%s1327_s21 + $0x650] sm:$0xff] %v628_v30  ;;  %v405_v30 = vld [vmem:[%s1308_s28 + $0x760] sm:$0xff]  ;;  %v661_v33 = vmul.f32 %v1315_v1, %v404_v28 }
  0xff   : > { %885 = vst [vmem:[%s1327_s21 + $0x658] sm:$0xff] %v629_v32  ;;  %v406_v32 = vld [vmem:[%s1308_s28 + $0x768] sm:$0xff]  ;;  %v662_v35 = vmul.f32 %v1315_v1, %v405_v30 }
 0x100   : > { %886 = vst [vmem:[%s1327_s21 + $0x660] sm:$0xff] %v630_v34  ;;  %v407_v34 = vld [vmem:[%s1308_s28 + $0x770] sm:$0xff]  ;;  %v663_v37 = vmul.f32 %v1315_v1, %v406_v32 }
 0x101   : > { %887 = vst [vmem:[%s1327_s21 + $0x668] sm:$0xff] %v631_v36  ;;  %v408_v36 = vld [vmem:[%s1308_s28 + $0x778] sm:$0xff]  ;;  %v664_v39 = vmul.f32 %v1315_v1, %v407_v34 }
 0x102   : > { %888 = vst [vmem:[%s1327_s21 + $0x670] sm:$0xff] %v632_v38  ;;  %v409_v38 = vld [vmem:[%s1308_s28 + $0x780] sm:$0xff]  ;;  %v665_v41 = vmul.f32 %v1315_v1, %v408_v36 }
 0x103   : > { %889 = vst [vmem:[%s1327_s21 + $0x678] sm:$0xff] %v633_v40  ;;  %v410_v40 = vld [vmem:[%s1308_s28 + $0x788] sm:$0xff]  ;;  %v666_v43 = vmul.f32 %v1315_v1, %v409_v38 }
 0x104   : > { %890 = vst [vmem:[%s1327_s21 + $0x680] sm:$0xff] %v634_v42  ;;  %v411_v42 = vld [vmem:[%s1308_s28 + $0x790] sm:$0xff]  ;;  %v667_v45 = vmul.f32 %v1315_v1, %v410_v40 }
 0x105   : > { %891 = vst [vmem:[%s1327_s21 + $0x688] sm:$0xff] %v635_v44  ;;  %v412_v44 = vld [vmem:[%s1308_s28 + $0x798] sm:$0xff]  ;;  %v668_v47 = vmul.f32 %v1315_v1, %v411_v42 }
 0x106   : > { %892 = vst [vmem:[%s1327_s21 + $0x690] sm:$0xff] %v636_v46  ;;  %v413_v46 = vld [vmem:[%s1308_s28 + $0x7a0] sm:$0xff]  ;;  %v669_v49 = vmul.f32 %v1315_v1, %v412_v44 }
 0x107   : > { %893 = vst [vmem:[%s1327_s21 + $0x698] sm:$0xff] %v637_v48  ;;  %v414_v48 = vld [vmem:[%s1308_s28 + $0x7a8] sm:$0xff]  ;;  %v670_v51 = vmul.f32 %v1315_v1, %v413_v46 }
 0x108   : > { %894 = vst [vmem:[%s1327_s21 + $0x6a0] sm:$0xff] %v638_v50  ;;  %v415_v50 = vld [vmem:[%s1308_s28 + $0x7b0] sm:$0xff]  ;;  %v671_v53 = vmul.f32 %v1315_v1, %v414_v48 }
 0x109   : > { %895 = vst [vmem:[%s1327_s21 + $0x6a8] sm:$0xff] %v639_v52  ;;  %v416_v52 = vld [vmem:[%s1308_s28 + $0x7b8] sm:$0xff]  ;;  %v672_v55 = vmul.f32 %v1315_v1, %v415_v50 }
 0x10a   : > { %896 = vst [vmem:[%s1327_s21 + $0x6b0] sm:$0xff] %v640_v54  ;;  %v417_v54 = vld [vmem:[%s1308_s28 + $0x7c0] sm:$0xff]  ;;  %v673_v57 = vmul.f32 %v1315_v1, %v416_v52 }
 0x10b   : > { %897 = vst [vmem:[%s1327_s21 + $0x6b8] sm:$0xff] %v641_v56  ;;  %v418_v56 = vld [vmem:[%s1308_s28 + $0x7c8] sm:$0xff]  ;;  %v674_v59 = vmul.f32 %v1315_v1, %v417_v54 }
 0x10c   : > { %898 = vst [vmem:[%s1327_s21 + $0x6c0] sm:$0xff] %v642_v58  ;;  %v419_v58 = vld [vmem:[%s1308_s28 + $0x7d0] sm:$0xff]  ;;  %v675_v61 = vmul.f32 %v1315_v1, %v418_v56 }
 0x10d   : > { %899 = vst [vmem:[%s1327_s21 + $0x6c8] sm:$0xff] %v643_v60  ;;  %v420_v60 = vld [vmem:[%s1308_s28 + $0x7d8] sm:$0xff]  ;;  %v676_v63 = vmul.f32 %v1315_v1, %v419_v58 }
 0x10e   : > { %900 = vst [vmem:[%s1327_s21 + $0x6d0] sm:$0xff] %v644_v62  ;;  %v421_v62 = vld [vmem:[%s1308_s28 + $0x7e0] sm:$0xff]  ;;  %v677_v2 = vmul.f32 %v1315_v1, %v420_v60 }
 0x10f   : > { %901 = vst [vmem:[%s1327_s21 + $0x6d8] sm:$0xff] %v645_v0  ;;  %v422_v0 = vld [vmem:[%s1308_s28 + $0x7e8] sm:$0xff]  ;;  %v678_v4 = vmul.f32 %v1315_v1, %v421_v62 }
 0x110   : > { %902 = vst [vmem:[%s1327_s21 + $0x6e0] sm:$0xff] %v646_v3  ;;  %v423_v3 = vld [vmem:[%s1308_s28 + $0x7f0] sm:$0xff]  ;;  %v679_v6 = vmul.f32 %v1315_v1, %v422_v0 }
 0x111   : > { %903 = vst [vmem:[%s1327_s21 + $0x6e8] sm:$0xff] %v647_v5  ;;  %v424_v5 = vld [vmem:[%s1308_s28 + $0x7f8] sm:$0xff] }
 0x112   : > { %904 = vst [vmem:[%s1327_s21 + $0x6f0] sm:$0xff] %v648_v7  ;;  %v680_v7 = vmul.f32 %v1315_v1, %v423_v3  ;;  %v681_v8 = vmul.f32 %v1315_v1, %v424_v5 }
 0x113   : > { %905 = vst [vmem:[%s1327_s21 + $0x6f8] sm:$0xff] %v649_v9 }
 0x114   : > { %906 = vst [vmem:[%s1327_s21 + $0x700] sm:$0xff] %v650_v11 }
 0x115   : > { %907 = vst [vmem:[%s1327_s21 + $0x708] sm:$0xff] %v651_v13 }
 0x116   : > { %908 = vst [vmem:[%s1327_s21 + $0x710] sm:$0xff] %v652_v15 }
 0x117   : > { %909 = vst [vmem:[%s1327_s21 + $0x718] sm:$0xff] %v653_v17 }
 0x118   : > { %910 = vst [vmem:[%s1327_s21 + $0x720] sm:$0xff] %v654_v19 }
 0x119   : > { %911 = vst [vmem:[%s1327_s21 + $0x728] sm:$0xff] %v655_v21 }
 0x11a   : > { %912 = vst [vmem:[%s1327_s21 + $0x730] sm:$0xff] %v656_v23 }
 0x11b   : > { %913 = vst [vmem:[%s1327_s21 + $0x738] sm:$0xff] %v657_v25 }
 0x11c   : > { %914 = vst [vmem:[%s1327_s21 + $0x740] sm:$0xff] %v658_v27 }
 0x11d   : > { %915 = vst [vmem:[%s1327_s21 + $0x748] sm:$0xff] %v659_v29 }
 0x11e   : > { %916 = vst [vmem:[%s1327_s21 + $0x750] sm:$0xff] %v660_v31 }
 0x11f   : > { %917 = vst [vmem:[%s1327_s21 + $0x758] sm:$0xff] %v661_v33 }
 0x120   : > { %918 = vst [vmem:[%s1327_s21 + $0x760] sm:$0xff] %v662_v35 }
 0x121   : > { %919 = vst [vmem:[%s1327_s21 + $0x768] sm:$0xff] %v663_v37 }
 0x122   : > { %920 = vst [vmem:[%s1327_s21 + $0x770] sm:$0xff] %v664_v39 }
 0x123   : > { %921 = vst [vmem:[%s1327_s21 + $0x778] sm:$0xff] %v665_v41 }
 0x124   : > { %922 = vst [vmem:[%s1327_s21 + $0x780] sm:$0xff] %v666_v43 }
 0x125   : > { %923 = vst [vmem:[%s1327_s21 + $0x788] sm:$0xff] %v667_v45 }
 0x126   : > { %924 = vst [vmem:[%s1327_s21 + $0x790] sm:$0xff] %v668_v47 }
 0x127   : > { %925 = vst [vmem:[%s1327_s21 + $0x798] sm:$0xff] %v669_v49 }
 0x128   : > { %926 = vst [vmem:[%s1327_s21 + $0x7a0] sm:$0xff] %v670_v51 }
 0x129   : > { %927 = vst [vmem:[%s1327_s21 + $0x7a8] sm:$0xff] %v671_v53 }
 0x12a   : > { %928 = vst [vmem:[%s1327_s21 + $0x7b0] sm:$0xff] %v672_v55 }
 0x12b   : > { %929 = vst [vmem:[%s1327_s21 + $0x7b8] sm:$0xff] %v673_v57 }
 0x12c   : > { %930 = vst [vmem:[%s1327_s21 + $0x7c0] sm:$0xff] %v674_v59 }
 0x12d   : > { %931 = vst [vmem:[%s1327_s21 + $0x7c8] sm:$0xff] %v675_v61 }
 0x12e   : > { %932 = vst [vmem:[%s1327_s21 + $0x7d0] sm:$0xff] %v676_v63 }
 0x12f   : > { %933 = vst [vmem:[%s1327_s21 + $0x7d8] sm:$0xff] %v677_v2 }
 0x130   : > { %934 = vst [vmem:[%s1327_s21 + $0x7e0] sm:$0xff] %v678_v4 }
 0x131   : > { %935 = vst [vmem:[%s1327_s21 + $0x7e8] sm:$0xff] %v679_v6 }
 0x132   : > { %936 = vst [vmem:[%s1327_s21 + $0x7f0] sm:$0xff] %v680_v7 }
 0x133   : > { %937 = vst [vmem:[%s1327_s21 + $0x7f8] sm:$0xff] %v681_v8 }
 0x134   : > { %1155 = shalt.err (!%p1152_p4)
}
 0x135   : > { %s1198_s24 = smov 1024   ;;  %s1199_s25 = smov 64  }
 0x136   : > { %1050 = dma.vmem_to_hbm [thread:$0]  (%p1268_p11), %s953_s5, 32768, %s955_s6, %s939_s7, %s1198_s24, %s1198_s24, %s1199_s25  }
 0x137 PF: > { %s969_s26 = sand.u32 1, %s1182_s11   ;;  %p2128_p7 = scmp.ge.s32.totalorder %s1194_s14, 2 }
 0x138   : > { %s970_s27 = scalar_lea.sflag [#allocation5], %s969_s26 }
 0x139   : > { %p1057_p5 = pnand %p2128_p7, %p1272_p12 }
 0x13b   : > { %p1058_p8 = pneg %p1057_p5 }
 0x13d   : > { %1177 = dma.done.wait (%p1058_p8), %s970_s27, 32768  }
 0x13e   : > { %1179 = vsyncadd (%p1058_p8), %s970_s27, 4294934528  ;;  %p16_p10 = scmp.ge.s32.totalorder %s1243_s16, 4   ;;  %s2129_s11 = smov %s1186_s12 }
 0x13f   : > { %s2130_s12 = smov %s1190_s13  ;;  %s2131_s13 = smov %s1255_s19 }
 0x140   : > { %s2132_s14 = smov %s1243_s16  ;;  %18 = sbr.rel (!%p16_p10) target bundleno = 7 (0x7), region = 73 }
 0x145   :  { %976 = vsyncpa [#allocation4], 1 }
 0x146   :  { %978 = vsyncpa [#allocation4 + $0x1], 1 }
 0x147   :  { %979 = vsyncpa [#allocation5], 1 }
 0x148   :  { %981 = vsyncpa [#allocation5 + $0x1], 1 }

</bundles_post_ra>
